<compile_context>
chip_gen: v7x
topology: tpu7x:2x2x1
jax: 0.10.0
libtpu: 0.0.40
codegen_flags: <defaults>
</compile_context>

<pallas_src>
import functools

import jax
import jax.numpy as jnp
from jax import lax
from jax.experimental import pallas as pl
from jax.experimental.pallas import tpu as pltpu


# ----------------------------------------------------------------------------
# Fused kernel: one (batch, q-block) tile per grid step.
#   - projects this step's KV block into the persistent VMEM cache,
#   - projects Q (softmax scale folded into Wq),
#   - flash-style online softmax over KV blocks 0..qi (mask only on block qi),
#   - fused output projection, lane-dense store.
# ----------------------------------------------------------------------------
def _mha_fused_kernel(x_ref, wq_ref, wkv_ref, wp_ref, b_ref, o_ref, kv_sc,
                      *, num_heads, head_size, blk, compute_dtype):
    qi = pl.program_id(1)
    C = num_heads * head_size

    x = x_ref[0].astype(compute_dtype)                          # (blk, C)

    # --- incremental K/V projection: only this step's (diagonal) KV block ---
    # The q-block grid axis is sequential ("arbitrary"), so cache rows
    # [0, (qi+1)*blk) are valid for the current batch element when read below.
    kv_new = jnp.dot(x, wkv_ref[...], preferred_element_type=jnp.float32)
    kv_off = pl.multiple_of(qi * blk, blk)
    kv_sc[pl.ds(kv_off, blk), :] = kv_new.astype(compute_dtype)  # lane-dense

    # --- Q projection (scale pre-folded into Wq); cast exactly once ---------
    q_pk = jnp.dot(x, wq_ref[...],
                   preferred_element_type=jnp.float32).astype(compute_dtype)

    # Causal mask is needed only on the diagonal KV block and is the same
    # lower-triangular pattern for every qi (q_blk == kv_blk == blk).
    row = lax.broadcasted_iota(jnp.int32, (blk, blk), 0)
    col = lax.broadcasted_iota(jnp.int32, (blk, blk), 1)
    diag_mask = col <= row

    approx = compute_dtype == jnp.bfloat16
    head_outs = []
    for h in range(num_heads):                     # small static head loop
        k_sl = slice(h * head_size, (h + 1) * head_size)
        v_sl = slice(C + h * head_size, C + (h + 1) * head_size)
        q_h = q_pk[:, k_sl]                                      # (blk, hs)

        def kv_step(j, carry, q_h=q_h, k_sl=k_sl, v_sl=v_sl):
            m_prev, l_prev, acc_prev = carry
            off = pl.multiple_of(j * blk, blk)
            k_h = kv_sc[pl.ds(off, blk), k_sl]                   # (blk, hs)
            v_h = kv_sc[pl.ds(off, blk), v_sl]                   # (blk, hs)
            # q_h @ k_h^T as an NT matmul (no materialized transpose).
            s = lax.dot_general(q_h, k_h, (((1,), (1,)), ((), ())),
                                preferred_element_type=jnp.float32)
            m_new = jnp.maximum(m_prev, jnp.max(s, axis=-1, keepdims=True))
            alpha = jnp.exp(m_prev - m_new)
            p = jnp.exp(s - m_new)
            l_new = alpha * l_prev + jnp.sum(p, axis=-1, keepdims=True)
            acc_new = alpha * acc_prev + jnp.dot(
                p.astype(compute_dtype), v_h, preferred_element_type=jnp.float32)
            return m_new, l_new, acc_new

        carry0 = (jnp.full((blk, 1), -jnp.inf, jnp.float32),
                  jnp.zeros((blk, 1), jnp.float32),
                  jnp.zeros((blk, head_size), jnp.float32))
        # Fully-below-diagonal KV blocks: unmasked fast path.
        m_i, l_i, acc = lax.fori_loop(0, qi, kv_step, carry0)

        # Diagonal KV block (always present): apply the causal mask.
        off = pl.multiple_of(qi * blk, blk)
        k_h = kv_sc[pl.ds(off, blk), k_sl]
        v_h = kv_sc[pl.ds(off, blk), v_sl]
        s = lax.dot_general(q_h, k_h, (((1,), (1,)), ((), ())),
                            preferred_element_type=jnp.float32)
        s = jnp.where(diag_mask, s, -jnp.inf)
        m_new = jnp.maximum(m_i, jnp.max(s, axis=-1, keepdims=True))
        alpha = jnp.exp(m_i - m_new)
        p = jnp.exp(s - m_new)
        l_i = alpha * l_i + jnp.sum(p, axis=-1, keepdims=True)
        acc = alpha * acc + jnp.dot(p.astype(compute_dtype), v_h,
                                    preferred_element_type=jnp.float32)
        # Every row of the diagonal block has >= 1 unmasked column, so l_i > 0
        # and m_i is finite (no exp(-inf - -inf) NaN) regardless of qi.
        head_outs.append(acc * pl.reciprocal(l_i, approx=approx))

    # --- fused output projection; lane-dense (blk, C) store in (B,T,C) ------
    attn = jnp.concatenate(head_outs, axis=-1).astype(compute_dtype)  # (blk, C)
    y = jnp.dot(attn, wp_ref[...], preferred_element_type=jnp.float32) + b_ref[...]
    # TODO(synk): attention/output dropout are identity here (eval-mode).
    o_ref[0] = y.astype(o_ref.dtype)


def _pick_block(t):
    # 256 keeps the per-head (blk, blk) f32 score tile at vreg-friendly size;
    # fall back to smaller divisors, else a single full-extent block.
    for blk in (256, 128, 64):
        if t % blk == 0:
            return blk
    return t


def _vmem_limit_bytes():
    # Generation-aware cap: ~75% of physical VMEM (v7x: 64 MiB -> 48 MiB,
    # v5e/v6e: 128 MiB -> 96 MiB), with a conservative fallback.
    limit = 48 * 1024 * 1024
    try:
        cap = int(pltpu.get_tpu_info().vmem_capacity_bytes)
        limit = int(min(cap * 3 // 4, 100 * 1024 * 1024))
    except Exception:
        pass
    return limit


# ----------------------------------------------------------------------------
# Wrapper: packs weights lane-dense, folds the softmax scale, builds the grid.
# ----------------------------------------------------------------------------
def multi_head_attention(x, params, *, compute_dtype=jnp.bfloat16, block=None):
    B, T, C = x.shape
    wq, wk, wv = params["wq"], params["wk"], params["wv"]       # (H, C, hs)
    H, _, hs = wq.shape
    assert H * hs == C
    scale = float(C) ** -0.5        # module scales by n_embd**-0.5 (C = n_embd)

    # Pack heads along lanes: column block [h*hs:(h+1)*hs] <- head h weight.
    wq_p = (jnp.transpose(wq, (1, 0, 2)).reshape(C, C) * scale).astype(compute_dtype)
    wk_p = jnp.transpose(wk, (1, 0, 2)).reshape(C, C)
    wv_p = jnp.transpose(wv, (1, 0, 2)).reshape(C, C)
    wkv_p = jnp.concatenate([wk_p, wv_p], axis=1).astype(compute_dtype)  # (C, 2C)
    wp = params["w_proj_t"].astype(compute_dtype)               # (C, C), pre-transposed
    b = params["b_proj"].astype(jnp.float32)                    # (1, C)

    blk = block or _pick_block(T)
    assert T % blk == 0

    # Persistent in-VMEM K/V cache for one batch element.
    kv_bytes = T * 2 * C * jnp.dtype(compute_dtype).itemsize
    # TODO(synk): for very long T (> ~32 MiB of K/V) add a streaming fallback
    # that re-tiles the KV axis instead of caching all of it in VMEM.
    assert kv_bytes <= 32 * 1024 * 1024, "K/V cache too large for VMEM"

    kernel = functools.partial(
        _mha_fused_kernel, num_heads=H, head_size=hs,
        blk=blk, compute_dtype=compute_dtype)

    return pl.pallas_call(
        kernel,
        out_shape=jax.ShapeDtypeStruct((B, T, C), x.dtype),
        grid_spec=pltpu.PrefetchScalarGridSpec(
            num_scalar_prefetch=0,
            grid=(B, T // blk),
            in_specs=[
                pl.BlockSpec((1, blk, C), lambda b_, qi: (b_, qi, 0)),  # x block
                pl.BlockSpec((C, C), lambda b_, qi: (0, 0)),            # Wq packed
                pl.BlockSpec((C, 2 * C), lambda b_, qi: (0, 0)),        # Wk|Wv packed
                pl.BlockSpec((C, C), lambda b_, qi: (0, 0)),            # Wproj^T
                pl.BlockSpec((1, C), lambda b_, qi: (0, 0)),            # bias
            ],
            out_specs=pl.BlockSpec((1, blk, C), lambda b_, qi: (b_, qi, 0)),
            scratch_shapes=[
                pltpu.VMEM((T, 2 * C), compute_dtype),   # K|V cache (per batch elem)
            ]),
        # qi must be sequential ("arbitrary"): the KV cache is built
        # incrementally block-by-block.  Megacore parallelism comes from the
        # leading B axis (on v7x, B >= 2 keeps both TensorCores busy).
        compiler_params=pltpu.CompilerParams(
            dimension_semantics=("parallel", "arbitrary"),
            vmem_limit_bytes=_vmem_limit_bytes()),
    )(x, wq_p, wkv_p, wp, b)


# ----------------------------------------------------------------------------
# Plain-JAX reference mirroring the PyTorch module (eval mode).
# ----------------------------------------------------------------------------
def reference_forward(x, params):
    B, T, C = x.shape
    scale = float(C) ** -0.5
    outs = []
    for h in range(params["wq"].shape[0]):
        q = x @ params["wq"][h]
        k = x @ params["wk"][h]
        v = x @ params["wv"][h]
        wei = jnp.einsum("btd,bsd->bts", q, k) * scale
        mask = jnp.tril(jnp.ones((T, T), bool))
        wei = jnp.where(mask, wei, -jnp.inf)
        wei = jax.nn.softmax(wei, axis=-1)
        outs.append(jnp.einsum("bts,bsd->btd", wei, v))
    cat = jnp.concatenate(outs, axis=-1)
    return cat @ params["w_proj_t"] + params["b_proj"][0]


if __name__ == "__main__":
    def make_params(key, n_embd, num_heads):
        head_size = n_embd // num_heads
        kq, kk, kv, kp, kb = jax.random.split(key, 5)
        s = 1.0 / jnp.sqrt(jnp.float32(n_embd))
        return {
            # per-head key/query/value weights, pre-transposed to (H, C, hs)
            "wq": jax.random.normal(kq, (num_heads, n_embd, head_size), jnp.float32) * s,
            "wk": jax.random.normal(kk, (num_heads, n_embd, head_size), jnp.float32) * s,
            "wv": jax.random.normal(kv, (num_heads, n_embd, head_size), jnp.float32) * s,
            # output projection, pre-transposed to (C, C), plus bias (kept 2D)
            "w_proj_t": jax.random.normal(kp, (n_embd, n_embd), jnp.float32) * s,
            "b_proj": jax.random.normal(kb, (1, n_embd), jnp.float32) * 0.01,
        }

    key = jax.random.PRNGKey(0)
    k1, k2, k3, k4 = jax.random.split(key, 4)

    # --- module-default small shapes: B=2, T=block_size=8, n_embd=32, H=4 ---
    B, T, n_embd, num_heads = 2, 8, 32, 4
    x = jax.random.normal(k1, (B, T, n_embd), jnp.float32)
    params = make_params(k2, n_embd, num_heads)
    y_ref = reference_forward(x, params)

    y_f32 = jax.block_until_ready(
        multi_head_attention(x, params, compute_dtype=jnp.float32))
    assert y_f32.shape == (B, T, n_embd)
    assert jnp.allclose(y_f32, y_ref, atol=1e-4, rtol=1e-4), "f32 mismatch (small)"

    y_bf16 = jax.block_until_ready(multi_head_attention(x, params))   # bf16 default
    assert jnp.allclose(y_bf16, y_ref, atol=1e-1, rtol=1e-1), "bf16 mismatch (small)"

    # --- moderate shapes: multi-block grid, incremental KV cache, mask path --
    B2, T2, C2, H2 = 2, 256, 128, 4
    x2 = jax.random.normal(k3, (B2, T2, C2), jnp.float32)
    params2 = make_params(k4, C2, H2)
    y2_ref = reference_forward(x2, params2)

    y2_f32 = jax.block_until_ready(
        multi_head_attention(x2, params2, compute_dtype=jnp.float32, block=64))
    assert jnp.allclose(y2_f32, y2_ref, atol=2e-3, rtol=2e-3), "f32 mismatch (medium)"

    y2_bf16 = jax.block_until_ready(multi_head_attention(x2, params2, block=64))
    assert jnp.allclose(y2_bf16, y2_ref, atol=1e-1, rtol=1e-1), "bf16 mismatch (medium)"

    print("KERNEL_OK")
</pallas_src>

<mosaic_0001>
module attributes {stable_mosaic.version = 11 : i64} {
  func.func @_mha_fused_kernel(%arg0: i32, %arg1: i32, %arg2: memref<1x8x32xf32, #tpu.memory_space<vmem>>, %arg3: memref<32x32xf32, #tpu.memory_space<vmem>>, %arg4: memref<32x64xf32, #tpu.memory_space<vmem>>, %arg5: memref<32x32xf32, #tpu.memory_space<vmem>>, %arg6: memref<1x32xf32, #tpu.memory_space<vmem>>, %arg7: memref<1x8x32xf32, #tpu.memory_space<vmem>>, %arg8: memref<8x64xf32, #tpu.memory_space<vmem>>) attributes {dimension_semantics = [#tpu.dimension_semantics<parallel>, #tpu.dimension_semantics<arbitrary>], iteration_bounds = array<i64: 2, 1>, scalar_prefetch = 0 : i64, scratch_operands = 1 : i64, tpu.core_type = #tpu.core_type<tc>, window_params = [{transform_indices = @transform_0, window_bounds = array<i64: 1, 8, 32>}, {pipeline_mode = #tpu.pipeline_mode<synchronous>, transform_indices = @transform_1, window_bounds = array<i64: 32, 32>}, {pipeline_mode = #tpu.pipeline_mode<synchronous>, transform_indices = @transform_2, window_bounds = array<i64: 32, 64>}, {pipeline_mode = #tpu.pipeline_mode<synchronous>, transform_indices = @transform_3, window_bounds = array<i64: 32, 32>}, {pipeline_mode = #tpu.pipeline_mode<synchronous>, transform_indices = @transform_4, window_bounds = array<i64: 1, 32>}, {transform_indices = @transform_5, window_bounds = array<i64: 1, 8, 32>}]} {
    %c0 = arith.constant 0 : index
    %c0_0 = arith.constant 0 : index
    %c0_1 = arith.constant 0 : index
    %0 = vector.load %arg2[%c0, %c0_0, %c0_1] : memref<1x8x32xf32, #tpu.memory_space<vmem>>, vector<1x8x32xf32>
    %1 = vector.shape_cast %0 : vector<1x8x32xf32> to vector<8x32xf32>
    %c0_2 = arith.constant 0 : index
    %c0_3 = arith.constant 0 : index
    %2 = vector.load %arg4[%c0_2, %c0_3] : memref<32x64xf32, #tpu.memory_space<vmem>>, vector<32x64xf32>
    %cst = arith.constant dense<0.000000e+00> : vector<8x64xf32>
    %3 = tpu.matmul %1, %2, %cst {dimension_numbers = #tpu.dot_dimension_numbers<[1], [0], [0], [1], [0, 0, 1, 1], [], []>} : vector<8x32xf32>, vector<32x64xf32>, vector<8x64xf32> -> vector<8x64xf32>
    %c8_i32 = arith.constant 8 : i32
    %4 = arith.muli %arg1, %c8_i32 : i32
    %5 = tpu.assume_multiple %4, 8 : i32
    %6 = arith.index_cast %5 : i32 to index
    %c0_4 = arith.constant 0 : index
    %7 = vector.load %arg8[%6, %c0_4] : memref<8x64xf32, #tpu.memory_space<vmem>>, vector<8x64xf32>
    tpu.vector_store %arg8[%6, %c0_4], %3 {strides = array<i32>} : memref<8x64xf32, #tpu.memory_space<vmem>>, vector<8x64xf32>,
    %c0_5 = arith.constant 0 : index
    %c0_6 = arith.constant 0 : index
    %8 = vector.load %arg3[%c0_5, %c0_6] : memref<32x32xf32, #tpu.memory_space<vmem>>, vector<32x32xf32>
    %cst_7 = arith.constant dense<0.000000e+00> : vector<8x32xf32>
    %9 = tpu.matmul %1, %8, %cst_7 {dimension_numbers = #tpu.dot_dimension_numbers<[1], [0], [0], [1], [0, 0, 1, 1], [], []>} : vector<8x32xf32>, vector<32x32xf32>, vector<8x32xf32> -> vector<8x32xf32>
    %10 = tpu.iota {dimensions = array<i32: 0>} : vector<8x8xi32>
    %11 = tpu.iota {dimensions = array<i32: 1>} : vector<8x8xi32>
    %12 = arith.cmpi sle, %11, %10 : vector<8x8xi32>
    %13 = vector.extract_strided_slice %9 {offsets = [0, 0], sizes = [8, 8], strides = [1, 1]} : vector<8x32xf32> to vector<8x8xf32>
    %cst_8 = arith.constant 0xFF800000 : f32
    %14 = vector.broadcast %cst_8 : f32 to vector<8x1xf32>
    %cst_9 = arith.constant 0.000000e+00 : f32
    %15 = vector.broadcast %cst_9 : f32 to vector<8x1xf32>
    %cst_10 = arith.constant 0.000000e+00 : f32
    %16 = vector.broadcast %cst_10 : f32 to vector<8x8xf32>
    %c0_i32 = arith.constant 0 : i32
    %17 = arith.subi %arg1, %c0_i32 : i32
    %18 = arith.addi %c0_i32, %17 : i32
    %c1_i32 = arith.constant 1 : i32
    %19:3 = scf.for %arg9 = %c0_i32 to %18 step %c1_i32 iter_args(%arg10 = %14, %arg11 = %15, %arg12 = %16) -> (vector<8x1xf32>, vector<8x1xf32>, vector<8x8xf32>)  : i32 {
      %c8_i32_59 = arith.constant 8 : i32
      %162 = arith.muli %arg9, %c8_i32_59 : i32
      %163 = tpu.assume_multiple %162, 8 : i32
      %164 = arith.index_cast %163 : i32 to index
      %c0_60 = arith.constant 0 : index
      %165 = vector.load %arg8[%164, %c0_60] : memref<8x64xf32, #tpu.memory_space<vmem>>, vector<8x8xf32>
      %166 = arith.index_cast %163 : i32 to index
      %c32_61 = arith.constant 32 : index
      %167 = vector.load %arg8[%166, %c32_61] : memref<8x64xf32, #tpu.memory_space<vmem>>, vector<8x8xf32>
      %cst_62 = arith.constant dense<0.000000e+00> : vector<8x8xf32>
      %168 = tpu.matmul %13, %165, %cst_62 {dimension_numbers = #tpu.dot_dimension_numbers<[1], [1], [0], [0], [0, 0, 1, 0], [], []>} : vector<8x8xf32>, vector<8x8xf32>, vector<8x8xf32> -> vector<8x8xf32>
      %cst_63 = arith.constant dense<0xFF800000> : vector<8xf32>
      %169 = vector.multi_reduction <maximumf>, %168, %cst_63 [1] : vector<8x8xf32> to vector<8xf32>
      %170 = vector.shape_cast %169 : vector<8xf32> to vector<8x1xf32>
      %171 = arith.maximumf %arg10, %170 : vector<8x1xf32>
      %172 = arith.subf %arg10, %171 : vector<8x1xf32>
      %173 = math.exp %172 : vector<8x1xf32>
      %174 = vector.broadcast %171 : vector<8x1xf32> to vector<8x8xf32>
      %175 = arith.subf %168, %174 : vector<8x8xf32>
      %176 = math.exp %175 : vector<8x8xf32>
      %177 = arith.mulf %173, %arg11 : vector<8x1xf32>
      %cst_64 = arith.constant dense<0.000000e+00> : vector<8xf32>
      %178 = vector.multi_reduction <add>, %176, %cst_64 [1] : vector<8x8xf32> to vector<8xf32>
      %179 = vector.shape_cast %178 : vector<8xf32> to vector<8x1xf32>
      %180 = arith.addf %177, %179 : vector<8x1xf32>
      %181 = vector.broadcast %173 : vector<8x1xf32> to vector<8x8xf32>
      %182 = arith.mulf %181, %arg12 : vector<8x8xf32>
      %cst_65 = arith.constant dense<0.000000e+00> : vector<8x8xf32>
      %183 = tpu.matmul %176, %167, %cst_65 {dimension_numbers = #tpu.dot_dimension_numbers<[1], [0], [0], [1], [0, 0, 1, 1], [], []>} : vector<8x8xf32>, vector<8x8xf32>, vector<8x8xf32> -> vector<8x8xf32>
      %184 = arith.addf %182, %183 : vector<8x8xf32>
      scf.yield %171, %180, %184 : vector<8x1xf32>, vector<8x1xf32>, vector<8x8xf32>
    }
    %c8_i32_11 = arith.constant 8 : i32
    %20 = arith.muli %arg1, %c8_i32_11 : i32
    %21 = tpu.assume_multiple %20, 8 : i32
    %22 = arith.index_cast %21 : i32 to index
    %c0_12 = arith.constant 0 : index
    %23 = vector.load %arg8[%22, %c0_12] : memref<8x64xf32, #tpu.memory_space<vmem>>, vector<8x8xf32>
    %24 = arith.index_cast %21 : i32 to index
    %c32 = arith.constant 32 : index
    %25 = vector.load %arg8[%24, %c32] : memref<8x64xf32, #tpu.memory_space<vmem>>, vector<8x8xf32>
    %cst_13 = arith.constant dense<0.000000e+00> : vector<8x8xf32>
    %26 = tpu.matmul %13, %23, %cst_13 {dimension_numbers = #tpu.dot_dimension_numbers<[1], [1], [0], [0], [0, 0, 1, 0], [], []>} : vector<8x8xf32>, vector<8x8xf32>, vector<8x8xf32> -> vector<8x8xf32>
    %cst_14 = arith.constant 0xFF800000 : f32
    %27 = vector.broadcast %cst_14 : f32 to vector<8x8xf32>
    %28 = arith.select %12, %26, %27 : vector<8x8xi1>, vector<8x8xf32>
    %cst_15 = arith.constant dense<0xFF800000> : vector<8xf32>
    %29 = vector.multi_reduction <maximumf>, %28, %cst_15 [1] : vector<8x8xf32> to vector<8xf32>
    %30 = vector.shape_cast %29 : vector<8xf32> to vector<8x1xf32>
    %31 = arith.maximumf %19#0, %30 : vector<8x1xf32>
    %32 = arith.subf %19#0, %31 : vector<8x1xf32>
    %33 = math.exp %32 : vector<8x1xf32>
    %34 = vector.broadcast %31 : vector<8x1xf32> to vector<8x8xf32>
    %35 = arith.subf %28, %34 : vector<8x8xf32>
    %36 = math.exp %35 : vector<8x8xf32>
    %37 = arith.mulf %33, %19#1 : vector<8x1xf32>
    %cst_16 = arith.constant dense<0.000000e+00> : vector<8xf32>
    %38 = vector.multi_reduction <add>, %36, %cst_16 [1] : vector<8x8xf32> to vector<8xf32>
    %39 = vector.shape_cast %38 : vector<8xf32> to vector<8x1xf32>
    %40 = arith.addf %37, %39 : vector<8x1xf32>
    %41 = vector.broadcast %33 : vector<8x1xf32> to vector<8x8xf32>
    %42 = arith.mulf %41, %19#2 : vector<8x8xf32>
    %cst_17 = arith.constant dense<0.000000e+00> : vector<8x8xf32>
    %43 = tpu.matmul %36, %25, %cst_17 {dimension_numbers = #tpu.dot_dimension_numbers<[1], [0], [0], [1], [0, 0, 1, 1], [], []>} : vector<8x8xf32>, vector<8x8xf32>, vector<8x8xf32> -> vector<8x8xf32>
    %44 = arith.addf %42, %43 : vector<8x8xf32>
    %45 = tpu.reciprocal %40 : vector<8x1xf32> -> vector<8x1xf32>
    %46 = vector.broadcast %45 : vector<8x1xf32> to vector<8x8xf32>
    %47 = arith.mulf %44, %46 : vector<8x8xf32>
    %48 = vector.extract_strided_slice %9 {offsets = [0, 8], sizes = [8, 8], strides = [1, 1]} : vector<8x32xf32> to vector<8x8xf32>
    %cst_18 = arith.constant 0xFF800000 : f32
    %49 = vector.broadcast %cst_18 : f32 to vector<8x1xf32>
    %cst_19 = arith.constant 0.000000e+00 : f32
    %50 = vector.broadcast %cst_19 : f32 to vector<8x1xf32>
    %cst_20 = arith.constant 0.000000e+00 : f32
    %51 = vector.broadcast %cst_20 : f32 to vector<8x8xf32>
    %c0_i32_21 = arith.constant 0 : i32
    %52 = arith.subi %arg1, %c0_i32_21 : i32
    %53 = arith.addi %c0_i32_21, %52 : i32
    %c1_i32_22 = arith.constant 1 : i32
    %54:3 = scf.for %arg9 = %c0_i32_21 to %53 step %c1_i32_22 iter_args(%arg10 = %49, %arg11 = %50, %arg12 = %51) -> (vector<8x1xf32>, vector<8x1xf32>, vector<8x8xf32>)  : i32 {
      %c8_i32_59 = arith.constant 8 : i32
      %162 = arith.muli %arg9, %c8_i32_59 : i32
      %163 = tpu.assume_multiple %162, 8 : i32
      %164 = arith.index_cast %163 : i32 to index
      %c8_60 = arith.constant 8 : index
      %165 = vector.load %arg8[%164, %c8_60] : memref<8x64xf32, #tpu.memory_space<vmem>>, vector<8x8xf32>
      %166 = arith.index_cast %163 : i32 to index
      %c40_61 = arith.constant 40 : index
      %167 = vector.load %arg8[%166, %c40_61] : memref<8x64xf32, #tpu.memory_space<vmem>>, vector<8x8xf32>
      %cst_62 = arith.constant dense<0.000000e+00> : vector<8x8xf32>
      %168 = tpu.matmul %48, %165, %cst_62 {dimension_numbers = #tpu.dot_dimension_numbers<[1], [1], [0], [0], [0, 0, 1, 0], [], []>} : vector<8x8xf32>, vector<8x8xf32>, vector<8x8xf32> -> vector<8x8xf32>
      %cst_63 = arith.constant dense<0xFF800000> : vector<8xf32>
      %169 = vector.multi_reduction <maximumf>, %168, %cst_63 [1] : vector<8x8xf32> to vector<8xf32>
      %170 = vector.shape_cast %169 : vector<8xf32> to vector<8x1xf32>
      %171 = arith.maximumf %arg10, %170 : vector<8x1xf32>
      %172 = arith.subf %arg10, %171 : vector<8x1xf32>
      %173 = math.exp %172 : vector<8x1xf32>
      %174 = vector.broadcast %171 : vector<8x1xf32> to vector<8x8xf32>
      %175 = arith.subf %168, %174 : vector<8x8xf32>
      %176 = math.exp %175 : vector<8x8xf32>
      %177 = arith.mulf %173, %arg11 : vector<8x1xf32>
      %cst_64 = arith.constant dense<0.000000e+00> : vector<8xf32>
      %178 = vector.multi_reduction <add>, %176, %cst_64 [1] : vector<8x8xf32> to vector<8xf32>
      %179 = vector.shape_cast %178 : vector<8xf32> to vector<8x1xf32>
      %180 = arith.addf %177, %179 : vector<8x1xf32>
      %181 = vector.broadcast %173 : vector<8x1xf32> to vector<8x8xf32>
      %182 = arith.mulf %181, %arg12 : vector<8x8xf32>
      %cst_65 = arith.constant dense<0.000000e+00> : vector<8x8xf32>
      %183 = tpu.matmul %176, %167, %cst_65 {dimension_numbers = #tpu.dot_dimension_numbers<[1], [0], [0], [1], [0, 0, 1, 1], [], []>} : vector<8x8xf32>, vector<8x8xf32>, vector<8x8xf32> -> vector<8x8xf32>
      %184 = arith.addf %182, %183 : vector<8x8xf32>
      scf.yield %171, %180, %184 : vector<8x1xf32>, vector<8x1xf32>, vector<8x8xf32>
    }
    %c8_i32_23 = arith.constant 8 : i32
    %55 = arith.muli %arg1, %c8_i32_23 : i32
    %56 = tpu.assume_multiple %55, 8 : i32
    %57 = arith.index_cast %56 : i32 to index
    %c8 = arith.constant 8 : index
    %58 = vector.load %arg8[%57, %c8] : memref<8x64xf32, #tpu.memory_space<vmem>>, vector<8x8xf32>
    %59 = arith.index_cast %56 : i32 to index
    %c40 = arith.constant 40 : index
    %60 = vector.load %arg8[%59, %c40] : memref<8x64xf32, #tpu.memory_space<vmem>>, vector<8x8xf32>
    %cst_24 = arith.constant dense<0.000000e+00> : vector<8x8xf32>
    %61 = tpu.matmul %48, %58, %cst_24 {dimension_numbers = #tpu.dot_dimension_numbers<[1], [1], [0], [0], [0, 0, 1, 0], [], []>} : vector<8x8xf32>, vector<8x8xf32>, vector<8x8xf32> -> vector<8x8xf32>
    %cst_25 = arith.constant 0xFF800000 : f32
    %62 = vector.broadcast %cst_25 : f32 to vector<8x8xf32>
    %63 = arith.select %12, %61, %62 : vector<8x8xi1>, vector<8x8xf32>
    %cst_26 = arith.constant dense<0xFF800000> : vector<8xf32>
    %64 = vector.multi_reduction <maximumf>, %63, %cst_26 [1] : vector<8x8xf32> to vector<8xf32>
    %65 = vector.shape_cast %64 : vector<8xf32> to vector<8x1xf32>
    %66 = arith.maximumf %54#0, %65 : vector<8x1xf32>
    %67 = arith.subf %54#0, %66 : vector<8x1xf32>
    %68 = math.exp %67 : vector<8x1xf32>
    %69 = vector.broadcast %66 : vector<8x1xf32> to vector<8x8xf32>
    %70 = arith.subf %63, %69 : vector<8x8xf32>
    %71 = math.exp %70 : vector<8x8xf32>
    %72 = arith.mulf %68, %54#1 : vector<8x1xf32>
    %cst_27 = arith.constant dense<0.000000e+00> : vector<8xf32>
    %73 = vector.multi_reduction <add>, %71, %cst_27 [1] : vector<8x8xf32> to vector<8xf32>
    %74 = vector.shape_cast %73 : vector<8xf32> to vector<8x1xf32>
    %75 = arith.addf %72, %74 : vector<8x1xf32>
    %76 = vector.broadcast %68 : vector<8x1xf32> to vector<8x8xf32>
    %77 = arith.mulf %76, %54#2 : vector<8x8xf32>
    %cst_28 = arith.constant dense<0.000000e+00> : vector<8x8xf32>
    %78 = tpu.matmul %71, %60, %cst_28 {dimension_numbers = #tpu.dot_dimension_numbers<[1], [0], [0], [1], [0, 0, 1, 1], [], []>} : vector<8x8xf32>, vector<8x8xf32>, vector<8x8xf32> -> vector<8x8xf32>
    %79 = arith.addf %77, %78 : vector<8x8xf32>
    %80 = tpu.reciprocal %75 : vector<8x1xf32> -> vector<8x1xf32>
    %81 = vector.broadcast %80 : vector<8x1xf32> to vector<8x8xf32>
    %82 = arith.mulf %79, %81 : vector<8x8xf32>
    %83 = vector.extract_strided_slice %9 {offsets = [0, 16], sizes = [8, 8], strides = [1, 1]} : vector<8x32xf32> to vector<8x8xf32>
    %cst_29 = arith.constant 0xFF800000 : f32
    %84 = vector.broadcast %cst_29 : f32 to vector<8x1xf32>
    %cst_30 = arith.constant 0.000000e+00 : f32
    %85 = vector.broadcast %cst_30 : f32 to vector<8x1xf32>
    %cst_31 = arith.constant 0.000000e+00 : f32
    %86 = vector.broadcast %cst_31 : f32 to vector<8x8xf32>
    %c0_i32_32 = arith.constant 0 : i32
    %87 = arith.subi %arg1, %c0_i32_32 : i32
    %88 = arith.addi %c0_i32_32, %87 : i32
    %c1_i32_33 = arith.constant 1 : i32
    %89:3 = scf.for %arg9 = %c0_i32_32 to %88 step %c1_i32_33 iter_args(%arg10 = %84, %arg11 = %85, %arg12 = %86) -> (vector<8x1xf32>, vector<8x1xf32>, vector<8x8xf32>)  : i32 {
      %c8_i32_59 = arith.constant 8 : i32
      %162 = arith.muli %arg9, %c8_i32_59 : i32
      %163 = tpu.assume_multiple %162, 8 : i32
      %164 = arith.index_cast %163 : i32 to index
      %c16_60 = arith.constant 16 : index
      %165 = vector.load %arg8[%164, %c16_60] : memref<8x64xf32, #tpu.memory_space<vmem>>, vector<8x8xf32>
      %166 = arith.index_cast %163 : i32 to index
      %c48_61 = arith.constant 48 : index
      %167 = vector.load %arg8[%166, %c48_61] : memref<8x64xf32, #tpu.memory_space<vmem>>, vector<8x8xf32>
      %cst_62 = arith.constant dense<0.000000e+00> : vector<8x8xf32>
      %168 = tpu.matmul %83, %165, %cst_62 {dimension_numbers = #tpu.dot_dimension_numbers<[1], [1], [0], [0], [0, 0, 1, 0], [], []>} : vector<8x8xf32>, vector<8x8xf32>, vector<8x8xf32> -> vector<8x8xf32>
      %cst_63 = arith.constant dense<0xFF800000> : vector<8xf32>
      %169 = vector.multi_reduction <maximumf>, %168, %cst_63 [1] : vector<8x8xf32> to vector<8xf32>
      %170 = vector.shape_cast %169 : vector<8xf32> to vector<8x1xf32>
      %171 = arith.maximumf %arg10, %170 : vector<8x1xf32>
      %172 = arith.subf %arg10, %171 : vector<8x1xf32>
      %173 = math.exp %172 : vector<8x1xf32>
      %174 = vector.broadcast %171 : vector<8x1xf32> to vector<8x8xf32>
      %175 = arith.subf %168, %174 : vector<8x8xf32>
      %176 = math.exp %175 : vector<8x8xf32>
      %177 = arith.mulf %173, %arg11 : vector<8x1xf32>
      %cst_64 = arith.constant dense<0.000000e+00> : vector<8xf32>
      %178 = vector.multi_reduction <add>, %176, %cst_64 [1] : vector<8x8xf32> to vector<8xf32>
      %179 = vector.shape_cast %178 : vector<8xf32> to vector<8x1xf32>
      %180 = arith.addf %177, %179 : vector<8x1xf32>
      %181 = vector.broadcast %173 : vector<8x1xf32> to vector<8x8xf32>
      %182 = arith.mulf %181, %arg12 : vector<8x8xf32>
      %cst_65 = arith.constant dense<0.000000e+00> : vector<8x8xf32>
      %183 = tpu.matmul %176, %167, %cst_65 {dimension_numbers = #tpu.dot_dimension_numbers<[1], [0], [0], [1], [0, 0, 1, 1], [], []>} : vector<8x8xf32>, vector<8x8xf32>, vector<8x8xf32> -> vector<8x8xf32>
      %184 = arith.addf %182, %183 : vector<8x8xf32>
      scf.yield %171, %180, %184 : vector<8x1xf32>, vector<8x1xf32>, vector<8x8xf32>
    }
    %c8_i32_34 = arith.constant 8 : i32
    %90 = arith.muli %arg1, %c8_i32_34 : i32
    %91 = tpu.assume_multiple %90, 8 : i32
    %92 = arith.index_cast %91 : i32 to index
    %c16 = arith.constant 16 : index
    %93 = vector.load %arg8[%92, %c16] : memref<8x64xf32, #tpu.memory_space<vmem>>, vector<8x8xf32>
    %94 = arith.index_cast %91 : i32 to index
    %c48 = arith.constant 48 : index
    %95 = vector.load %arg8[%94, %c48] : memref<8x64xf32, #tpu.memory_space<vmem>>, vector<8x8xf32>
    %cst_35 = arith.constant dense<0.000000e+00> : vector<8x8xf32>
    %96 = tpu.matmul %83, %93, %cst_35 {dimension_numbers = #tpu.dot_dimension_numbers<[1], [1], [0], [0], [0, 0, 1, 0], [], []>} : vector<8x8xf32>, vector<8x8xf32>, vector<8x8xf32> -> vector<8x8xf32>
    %cst_36 = arith.constant 0xFF800000 : f32
    %97 = vector.broadcast %cst_36 : f32 to vector<8x8xf32>
    %98 = arith.select %12, %96, %97 : vector<8x8xi1>, vector<8x8xf32>
    %cst_37 = arith.constant dense<0xFF800000> : vector<8xf32>
    %99 = vector.multi_reduction <maximumf>, %98, %cst_37 [1] : vector<8x8xf32> to vector<8xf32>
    %100 = vector.shape_cast %99 : vector<8xf32> to vector<8x1xf32>
    %101 = arith.maximumf %89#0, %100 : vector<8x1xf32>
    %102 = arith.subf %89#0, %101 : vector<8x1xf32>
    %103 = math.exp %102 : vector<8x1xf32>
    %104 = vector.broadcast %101 : vector<8x1xf32> to vector<8x8xf32>
    %105 = arith.subf %98, %104 : vector<8x8xf32>
    %106 = math.exp %105 : vector<8x8xf32>
    %107 = arith.mulf %103, %89#1 : vector<8x1xf32>
    %cst_38 = arith.constant dense<0.000000e+00> : vector<8xf32>
    %108 = vector.multi_reduction <add>, %106, %cst_38 [1] : vector<8x8xf32> to vector<8xf32>
    %109 = vector.shape_cast %108 : vector<8xf32> to vector<8x1xf32>
    %110 = arith.addf %107, %109 : vector<8x1xf32>
    %111 = vector.broadcast %103 : vector<8x1xf32> to vector<8x8xf32>
    %112 = arith.mulf %111, %89#2 : vector<8x8xf32>
    %cst_39 = arith.constant dense<0.000000e+00> : vector<8x8xf32>
    %113 = tpu.matmul %106, %95, %cst_39 {dimension_numbers = #tpu.dot_dimension_numbers<[1], [0], [0], [1], [0, 0, 1, 1], [], []>} : vector<8x8xf32>, vector<8x8xf32>, vector<8x8xf32> -> vector<8x8xf32>
    %114 = arith.addf %112, %113 : vector<8x8xf32>
    %115 = tpu.reciprocal %110 : vector<8x1xf32> -> vector<8x1xf32>
    %116 = vector.broadcast %115 : vector<8x1xf32> to vector<8x8xf32>
    %117 = arith.mulf %114, %116 : vector<8x8xf32>
    %118 = vector.extract_strided_slice %9 {offsets = [0, 24], sizes = [8, 8], strides = [1, 1]} : vector<8x32xf32> to vector<8x8xf32>
    %cst_40 = arith.constant 0xFF800000 : f32
    %119 = vector.broadcast %cst_40 : f32 to vector<8x1xf32>
    %cst_41 = arith.constant 0.000000e+00 : f32
    %120 = vector.broadcast %cst_41 : f32 to vector<8x1xf32>
    %cst_42 = arith.constant 0.000000e+00 : f32
    %121 = vector.broadcast %cst_42 : f32 to vector<8x8xf32>
    %c0_i32_43 = arith.constant 0 : i32
    %122 = arith.subi %arg1, %c0_i32_43 : i32
    %123 = arith.addi %c0_i32_43, %122 : i32
    %c1_i32_44 = arith.constant 1 : i32
    %124:3 = scf.for %arg9 = %c0_i32_43 to %123 step %c1_i32_44 iter_args(%arg10 = %119, %arg11 = %120, %arg12 = %121) -> (vector<8x1xf32>, vector<8x1xf32>, vector<8x8xf32>)  : i32 {
      %c8_i32_59 = arith.constant 8 : i32
      %162 = arith.muli %arg9, %c8_i32_59 : i32
      %163 = tpu.assume_multiple %162, 8 : i32
      %164 = arith.index_cast %163 : i32 to index
      %c24_60 = arith.constant 24 : index
      %165 = vector.load %arg8[%164, %c24_60] : memref<8x64xf32, #tpu.memory_space<vmem>>, vector<8x8xf32>
      %166 = arith.index_cast %163 : i32 to index
      %c56_61 = arith.constant 56 : index
      %167 = vector.load %arg8[%166, %c56_61] : memref<8x64xf32, #tpu.memory_space<vmem>>, vector<8x8xf32>
      %cst_62 = arith.constant dense<0.000000e+00> : vector<8x8xf32>
      %168 = tpu.matmul %118, %165, %cst_62 {dimension_numbers = #tpu.dot_dimension_numbers<[1], [1], [0], [0], [0, 0, 1, 0], [], []>} : vector<8x8xf32>, vector<8x8xf32>, vector<8x8xf32> -> vector<8x8xf32>
      %cst_63 = arith.constant dense<0xFF800000> : vector<8xf32>
      %169 = vector.multi_reduction <maximumf>, %168, %cst_63 [1] : vector<8x8xf32> to vector<8xf32>
      %170 = vector.shape_cast %169 : vector<8xf32> to vector<8x1xf32>
      %171 = arith.maximumf %arg10, %170 : vector<8x1xf32>
      %172 = arith.subf %arg10, %171 : vector<8x1xf32>
      %173 = math.exp %172 : vector<8x1xf32>
      %174 = vector.broadcast %171 : vector<8x1xf32> to vector<8x8xf32>
      %175 = arith.subf %168, %174 : vector<8x8xf32>
      %176 = math.exp %175 : vector<8x8xf32>
      %177 = arith.mulf %173, %arg11 : vector<8x1xf32>
      %cst_64 = arith.constant dense<0.000000e+00> : vector<8xf32>
      %178 = vector.multi_reduction <add>, %176, %cst_64 [1] : vector<8x8xf32> to vector<8xf32>
      %179 = vector.shape_cast %178 : vector<8xf32> to vector<8x1xf32>
      %180 = arith.addf %177, %179 : vector<8x1xf32>
      %181 = vector.broadcast %173 : vector<8x1xf32> to vector<8x8xf32>
      %182 = arith.mulf %181, %arg12 : vector<8x8xf32>
      %cst_65 = arith.constant dense<0.000000e+00> : vector<8x8xf32>
      %183 = tpu.matmul %176, %167, %cst_65 {dimension_numbers = #tpu.dot_dimension_numbers<[1], [0], [0], [1], [0, 0, 1, 1], [], []>} : vector<8x8xf32>, vector<8x8xf32>, vector<8x8xf32> -> vector<8x8xf32>
      %184 = arith.addf %182, %183 : vector<8x8xf32>
      scf.yield %171, %180, %184 : vector<8x1xf32>, vector<8x1xf32>, vector<8x8xf32>
    }
    %c8_i32_45 = arith.constant 8 : i32
    %125 = arith.muli %arg1, %c8_i32_45 : i32
    %126 = tpu.assume_multiple %125, 8 : i32
    %127 = arith.index_cast %126 : i32 to index
    %c24 = arith.constant 24 : index
    %128 = vector.load %arg8[%127, %c24] : memref<8x64xf32, #tpu.memory_space<vmem>>, vector<8x8xf32>
    %129 = arith.index_cast %126 : i32 to index
    %c56 = arith.constant 56 : index
    %130 = vector.load %arg8[%129, %c56] : memref<8x64xf32, #tpu.memory_space<vmem>>, vector<8x8xf32>
    %cst_46 = arith.constant dense<0.000000e+00> : vector<8x8xf32>
    %131 = tpu.matmul %118, %128, %cst_46 {dimension_numbers = #tpu.dot_dimension_numbers<[1], [1], [0], [0], [0, 0, 1, 0], [], []>} : vector<8x8xf32>, vector<8x8xf32>, vector<8x8xf32> -> vector<8x8xf32>
    %cst_47 = arith.constant 0xFF800000 : f32
    %132 = vector.broadcast %cst_47 : f32 to vector<8x8xf32>
    %133 = arith.select %12, %131, %132 : vector<8x8xi1>, vector<8x8xf32>
    %cst_48 = arith.constant dense<0xFF800000> : vector<8xf32>
    %134 = vector.multi_reduction <maximumf>, %133, %cst_48 [1] : vector<8x8xf32> to vector<8xf32>
    %135 = vector.shape_cast %134 : vector<8xf32> to vector<8x1xf32>
    %136 = arith.maximumf %124#0, %135 : vector<8x1xf32>
    %137 = arith.subf %124#0, %136 : vector<8x1xf32>
    %138 = math.exp %137 : vector<8x1xf32>
    %139 = vector.broadcast %136 : vector<8x1xf32> to vector<8x8xf32>
    %140 = arith.subf %133, %139 : vector<8x8xf32>
    %141 = math.exp %140 : vector<8x8xf32>
    %142 = arith.mulf %138, %124#1 : vector<8x1xf32>
    %cst_49 = arith.constant dense<0.000000e+00> : vector<8xf32>
    %143 = vector.multi_reduction <add>, %141, %cst_49 [1] : vector<8x8xf32> to vector<8xf32>
    %144 = vector.shape_cast %143 : vector<8xf32> to vector<8x1xf32>
    %145 = arith.addf %142, %144 : vector<8x1xf32>
    %146 = vector.broadcast %138 : vector<8x1xf32> to vector<8x8xf32>
    %147 = arith.mulf %146, %124#2 : vector<8x8xf32>
    %cst_50 = arith.constant dense<0.000000e+00> : vector<8x8xf32>
    %148 = tpu.matmul %141, %130, %cst_50 {dimension_numbers = #tpu.dot_dimension_numbers<[1], [0], [0], [1], [0, 0, 1, 1], [], []>} : vector<8x8xf32>, vector<8x8xf32>, vector<8x8xf32> -> vector<8x8xf32>
    %149 = arith.addf %147, %148 : vector<8x8xf32>
    %150 = tpu.reciprocal %145 : vector<8x1xf32> -> vector<8x1xf32>
    %151 = vector.broadcast %150 : vector<8x1xf32> to vector<8x8xf32>
    %152 = arith.mulf %149, %151 : vector<8x8xf32>
    %153 = tpu.concatenate %47, %82, %117, %152 in 1 : vector<8x8xf32>, vector<8x8xf32>, vector<8x8xf32>, vector<8x8xf32> -> vector<8x32xf32>
    %c0_51 = arith.constant 0 : index
    %c0_52 = arith.constant 0 : index
    %154 = vector.load %arg5[%c0_51, %c0_52] : memref<32x32xf32, #tpu.memory_space<vmem>>, vector<32x32xf32>
    %cst_53 = arith.constant dense<0.000000e+00> : vector<8x32xf32>
    %155 = tpu.matmul %153, %154, %cst_53 {dimension_numbers = #tpu.dot_dimension_numbers<[1], [0], [0], [1], [0, 0, 1, 1], [], []>} : vector<8x32xf32>, vector<32x32xf32>, vector<8x32xf32> -> vector<8x32xf32>
    %c0_54 = arith.constant 0 : index
    %c0_55 = arith.constant 0 : index
    %156 = vector.load %arg6[%c0_54, %c0_55] : memref<1x32xf32, #tpu.memory_space<vmem>>, vector<1x32xf32>
    %157 = vector.broadcast %156 : vector<1x32xf32> to vector<8x32xf32>
    %158 = arith.addf %155, %157 : vector<8x32xf32>
    %c0_56 = arith.constant 0 : index
    %c0_57 = arith.constant 0 : index
    %c0_58 = arith.constant 0 : index
    %159 = vector.load %arg7[%c0_56, %c0_57, %c0_58] : memref<1x8x32xf32, #tpu.memory_space<vmem>>, vector<1x8x32xf32>
    %160 = vector.shape_cast %159 : vector<1x8x32xf32> to vector<8x32xf32>
    %161 = vector.shape_cast %158 : vector<8x32xf32> to vector<1x8x32xf32>
    tpu.vector_store %arg7[%c0_56, %c0_57, %c0_58], %161 {strides = array<i32>} : memref<1x8x32xf32, #tpu.memory_space<vmem>>, vector<1x8x32xf32>,
    return
  }
  func.func @transform_0(%arg0: i32, %arg1: i32) -> (i32, i32, i32) {
    %c0_i32 = arith.constant 0 : i32
    %c0_i32_0 = arith.constant 0 : i32
    return %arg0, %arg1, %c0_i32 : i32, i32, i32
  }
  func.func @transform_1(%arg0: i32, %arg1: i32) -> (i32, i32) {
    %c0_i32 = arith.constant 0 : i32
    %c0_i32_0 = arith.constant 0 : i32
    %c0_i32_1 = arith.constant 0 : i32
    return %c0_i32, %c0_i32_0 : i32, i32
  }
  func.func @transform_2(%arg0: i32, %arg1: i32) -> (i32, i32) {
    %c0_i32 = arith.constant 0 : i32
    %c0_i32_0 = arith.constant 0 : i32
    %c0_i32_1 = arith.constant 0 : i32
    return %c0_i32, %c0_i32_0 : i32, i32
  }
  func.func @transform_3(%arg0: i32, %arg1: i32) -> (i32, i32) {
    %c0_i32 = arith.constant 0 : i32
    %c0_i32_0 = arith.constant 0 : i32
    %c0_i32_1 = arith.constant 0 : i32
    return %c0_i32, %c0_i32_0 : i32, i32
  }
  func.func @transform_4(%arg0: i32, %arg1: i32) -> (i32, i32) {
    %c0_i32 = arith.constant 0 : i32
    %c0_i32_0 = arith.constant 0 : i32
    %c0_i32_1 = arith.constant 0 : i32
    return %c0_i32, %c0_i32_0 : i32, i32
  }
  func.func @transform_5(%arg0: i32, %arg1: i32) -> (i32, i32, i32) {
    %c0_i32 = arith.constant 0 : i32
    %c0_i32_0 = arith.constant 0 : i32
    return %arg0, %arg1, %c0_i32 : i32, i32, i32
  }
}

</mosaic_0001>

<bundles_post_ra>
// kernel: tpu_custom_call.1
= control target key start
LH: loop header
LB: loop body
LE: loop exit
PB: predicated region body
PF: predicated region fallthrough
CT: control target
= control target key end

     0   :  { %10 = vsyncpa [#allocation4], 0  ;;  %s3122_s0 = inlined_call_operand.hbm [shape: f32[2,8,32], index: 0, kind: input, shape index: {}]   ;;  %s3123_s1 = inlined_call_operand.hbm [shape: f32[32,32], index: 1, kind: input, shape index: {}]   ;;  %s3124_s2 = inlined_call_operand.hbm [shape: f32[32,64], index: 2, kind: input, shape index: {}]   ;;  %s3125_s3 = inlined_call_operand.hbm [shape: f32[32,32], index: 3, kind: input, shape index: {}]   ;;  %s3126_s4 = inlined_call_operand.vmem [shape: f32[1,32], index: 4, kind: input, shape index: {}]   ;;  %s3127_s5 = inlined_call_operand.hbm [shape: f32[2,8,32], index: 5, kind: output, shape index: {}]  }
   0x1   :  { %12 = vsyncpa [#allocation4 + $0x1], 0 }
   0x2   :  { %13 = vsyncpa [#allocation7], 0 }
   0x3   :  { %14 = vsyncpa [#allocation10], 0 }
   0x4   :  { %15 = vsyncpa [#allocation5], 0 }
   0x5   :  { %17 = vsyncpa [#allocation5 + $0x1], 0  ;;  %s2746_s18 = smov 0   ;;  %s2748_s19 = smov 0  }
   0x6   :  { %s2750_s20 = smov 0   ;;  %s2752_s21 = smov 0  }
   0x7   :  { %s2754_s22 = smov 0   ;;  %s2756_s23 = smov 0  }
   0x8 LB: > { %3134 = sst [smem:[#allocation16_spill]] %s2674_s18  ;;  %s2185_s24 = sadd.s32 4294967295, %s2694_s23   ;;  %s2694_s23 = sphi %s2756_s23, %s23_s23   ;;  %s2690_s22 = sphi %s2754_s22, %s3157_s22   ;;  %s2686_s21 = sphi %s2752_s21, %s3156_s21   ;;  %s2682_s20 = sphi %s2750_s20, %s3155_s20   ;;  %s2678_s19 = sphi %s2748_s19, %s3154_s19   ;;  %s2674_s18 = sphi %s2746_s18, %s3153_s18  }
   0x9   : > { %s2186_s25 = sadd.s32 4294967294, %s2694_s23   ;;  %p57_p0 = scmp.ne.s32.totalorder %s2678_s19, %s2674_s18 }
   0xa   : > { %p2780_p1 = scmp.eq.s32.totalorder %s2185_s24, 0  ;;  %p2784_p2 = scmp.eq.s32.totalorder %s2185_s24, 1 }
   0xb   : > { %p173_p3 = scmp.eq.s32.totalorder %s2186_s25, 1  ;;  %p2187_p5 = scmp.ge.s32.totalorder %s2694_s23, 1 }
   0xc   : > { %s3135_s26 = scalar_select %p2780_p1, 1, 0 }
   0xd   : > { %s3136_s27 = scalar_select %p2784_p2, 1, 0 }
   0xe   : > { %p2790_p4 = por %p2780_p1, %p57_p0  ;;  %p2795_p6 = por %p173_p3, %p57_p0 }
   0xf   : > { %p180_p7 = scmp.lt.s32.totalorder %s2694_s23, 3  ;;  %s2696_s6 = smov [#allocation6]  }
  0x10   : > { %s3137_s28 = scalar_select %p2790_p4, 1, 0 }
  0x11   : > { %s3138_s29 = scalar_select %p2795_p6, 1, 0 }
  0x12   : > { %p2800_p8 = pnand %p2187_p5, %p180_p7  ;;  %s192_s7 = sshll.u32 %s2696_s6, 4  ;;  %s2804_s7 = int_to_ptr.vmem [resolvable:$true] %s192_s7 }
  0x13   : > { %3139 = sst [smem:[#allocation17_spill]] %s3138_s29  ;;  %s2697_s9 = smov [#allocation8]  }
  0x14   : > { %s3140_s30 = scalar_select %p2800_p8, 1, 0 }
  0x15   : > { %p2374_p9 = pneg %p2800_p8  ;;  %s205_s10 = sshll.u32 %s2697_s9, 4  ;;  %s2815_s10 = int_to_ptr.vmem [resolvable:$true] %s205_s10 }
  0x16   : > { %s2698_s11 = smov [#allocation9]   ;;  %s2490_s15 = scalar_lea.hbm %s3123_s1, 512 }
  0x17   : > { %p2811_p11 = pnand %p2374_p9, %p2780_p1  ;;  %s2817_s12 = sshll.u32 %s2698_s11, 4  ;;  %s219_s12 = int_to_ptr.vmem [resolvable:$true] %s2817_s12 }
  0x18   : > { %p2491_p12 = scmp.ne.s32.totalorder %s3123_s1, %s2490_s15  ;;  %p2497_p5 = scmp.lt.u32.totalorder %s2490_s15, %s3123_s1 }
  0x19   : > { %p2827_p13 = pneg %p2811_p11 }
  0x1b   : > { %p2493_p0 = pnand %p2827_p13, %p2491_p12 }
  0x1d   : > { %p2494_p3 = pneg %p2493_p0 }
  0x1f   : > { %p2499_p7 = pnand %p2497_p5, %p2494_p3 }
  0x21   : > { %2502 = shalt.err (!%p2499_p7)
}
  0x22   : > { %s2503_s9 = scalar_lea.vmem %s2804_s7, 512  ;;  %p2511_p1 = scmp.lt.s32.totalorder %s2804_s7, %s2804_s7 }
  0x23   : > { %p2504_p9 = scmp.ne.s32.totalorder %s2804_s7, %s2503_s9  ;;  %p2512_p4 = scmp.lt.s32.totalorder %s2503_s9, %s2503_s9 }
  0x25   : > { %p2506_p10 = pnand %p2504_p9, %p2827_p13  ;;  %p2513_p12 = por %p2512_p4, %p2511_p1 }
  0x27   : > { %p2507_p6 = pneg %p2506_p10 }
  0x29   : > { %p2514_p0 = pnand %p2513_p12, %p2507_p6 }
  0x2b   : > { %2517 = shalt.err (!%p2514_p0)
}
  0x2c   : > { %s2699_s11 = smov 128   ;;  %s2700_s13 = smov 8  }
  0x2d   : > { %2377 = dma.hbm_to_vmem [thread:$0]  (!%p2811_p11), %s3123_s1, 512, %s2804_s7, [#allocation7], %s2699_s11, %s2699_s11, %s2700_s13  }
  0x2e   : > { %s2518_s25 = scalar_lea.hbm %s3124_s2, 512 }
  0x2f   : > { %p2519_p1 = scmp.ne.s32.totalorder %s3124_s2, %s2518_s25  ;;  %p2525_p10 = scmp.lt.u32.totalorder %s2518_s25, %s3124_s2 }
  0x31   : > { %p2521_p4 = pnand %p2519_p1, %p2827_p13 }
  0x33   : > { %p2522_p6 = pneg %p2521_p4 }
  0x35   : > { %p2527_p3 = pnand %p2525_p10, %p2522_p6 }
  0x37   : > { %2530 = shalt.err (!%p2527_p3)
}
  0x38   : > { %s2531_s7 = scalar_lea.vmem %s2815_s10, 512  ;;  %p2539_p12 = scmp.lt.s32.totalorder %s2815_s10, %s2815_s10 }
  0x39   : > { %p2532_p5 = scmp.ne.s32.totalorder %s2815_s10, %s2531_s7  ;;  %p2540_p0 = scmp.lt.s32.totalorder %s2531_s7, %s2531_s7 }
  0x3b   : > { %p2534_p7 = pnand %p2532_p5, %p2827_p13  ;;  %p2541_p1 = por %p2540_p0, %p2539_p12 }
  0x3d   : > { %p2535_p9 = pneg %p2534_p7 }
  0x3f   : > { %p2542_p4 = pnand %p2541_p1, %p2535_p9 }
  0x41   : > { %2545 = shalt.err (!%p2542_p4)
}
  0x42   : > { %2380 = dma.hbm_to_vmem [thread:$0]  (!%p2811_p11), %s3124_s2, 512, %s2815_s10, [#allocation7], %s2699_s11, %s2699_s11, %s2700_s13  }
  0x43   : > { %s2546_s16 = scalar_lea.hbm %s3125_s3, 512 }
  0x44   : > { %p2547_p6 = scmp.ne.s32.totalorder %s3125_s3, %s2546_s16  ;;  %p2553_p5 = scmp.lt.u32.totalorder %s2546_s16, %s3125_s3 }
  0x46   : > { %p2549_p10 = pnand %p2547_p6, %p2827_p13 }
  0x48   : > { %p2550_p3 = pneg %p2549_p10 }
  0x4a   : > { %p2555_p7 = pnand %p2553_p5, %p2550_p3 }
  0x4c   : > { %2558 = shalt.err (!%p2555_p7)
}
  0x4d   : > { %s2559_s7 = scalar_lea.vmem %s219_s12, 512  ;;  %p2567_p1 = scmp.lt.s32.totalorder %s219_s12, %s219_s12 }
  0x4e   : > { %p2560_p9 = scmp.ne.s32.totalorder %s219_s12, %s2559_s7  ;;  %p2568_p4 = scmp.lt.s32.totalorder %s2559_s7, %s2559_s7 }
  0x50   : > { %p2562_p12 = pnand %p2560_p9, %p2827_p13  ;;  %p2569_p8 = por %p2568_p4, %p2567_p1 }
  0x52   : > { %p2563_p0 = pneg %p2562_p12 }
  0x54   : > { %p2570_p2 = pnand %p2569_p8, %p2563_p0 }
  0x56   : > { %2573 = shalt.err (!%p2570_p2)
}
  0x57   : > { %2383 = dma.hbm_to_vmem [thread:$0]  (!%p2811_p11), %s3125_s3, 512, %s219_s12, [#allocation10], %s2699_s11, %s2699_s11, %s2700_s13  }
  0x58   : > { %s44_s24 = sadd.s32 1, %s2682_s20  ;;  %s35_s8 = sadd.s32 1, %s2690_s22 }
  0x59   : > { %p51_p2 = scmp.ne.s32.totalorder %s2682_s20, %s2678_s19  ;;  %p37_p8 = scmp.ge.s32.totalorder %s35_s8, 2 }
  0x5a   : > { %p52_p13 = scmp.eq.s32.totalorder %s2694_s23, 0  ;;  %p3143_p6 = scmp.ne.s32.totalorder %s3136_s27, 0 }
  0x5b   : > { %p2395_p3 = scmp.lt.s32.totalorder %s2694_s23, 2  ;;  %s3159_s8 = smov (%p37_p8, %s35_s8), 0 }
  0x5c   : > { %p2906_p10 = por %p3143_p6, %p51_p2  ;;  %p53_p5 = por %p52_p13, %p51_p2 }
  0x5d   : > { %s235_s14 = sand.u32 1, %s2682_s20   ;;  %s39_s15 = ssub.s32 %s2690_s22, %s3159_s8 }
  0x5e   : > { %p42_p7 = scmp.eq.s32.totalorder %s39_s15, 0  ;;  %s2192_s12 = sshll.u32 %s235_s14, 3 }
  0x5f   : > { %s2193_s11 = sshll.u32 %s2690_s22, 7  ;;  %s239_s25 = scalar_lea.vmem [#allocation3], %s2192_s12 }
  0x60   : > { %s2918_s13 = scalar_select %p42_p7, %s2682_s20, %s44_s24  }
  0x61   : > { %s2923_s27 = scalar_lea.hbm %s3122_s0, %s2193_s11  ;;  %s247_s6 = sshll.u32 %s239_s25, 4  ;;  %s2925_s6 = int_to_ptr.vmem [resolvable:$true] %s247_s6 }
  0x62   : > { %p2929_p11 = pnand %p2395_p3, %p53_p5  ;;  %s236_s7 = scalar_lea.sflag [#allocation4], %s235_s14 }
  0x63   : > { %s2574_s10 = scalar_lea.hbm %s2923_s27, 128  ;;  %s2579_s15 = scalar_lea.hbm %s3122_s0, 256 }
  0x64   : > { %p2575_p9 = scmp.ne.s32.totalorder %s2923_s27, %s2574_s10  ;;  %p2576_p12 = pneg %p2929_p11 }
  0x65   : > { %p2580_p4 = scmp.lt.u32.totalorder %s2923_s27, %s3122_s0  ;;  %p2581_p2 = scmp.lt.u32.totalorder %s2579_s15, %s2574_s10 }
  0x66   : > { %p2577_p0 = pnand %p2576_p12, %p2575_p9  ;;  %p2583_p13 = scmp.lt.u32.totalorder %s2574_s10, %s2923_s27 }
  0x67   : > { %p2582_p8 = por %p2581_p2, %p2580_p4 }
  0x68   : > { %p2578_p1 = pneg %p2577_p0 }
  0x69   : > { %p2584_p6 = por %p2583_p13, %p2582_p8 }
  0x6b   : > { %p2585_p3 = pnand %p2584_p6, %p2578_p1 }
  0x6d   : > { %2588 = shalt.err (!%p2585_p3)
}
  0x6e   : > { %s2589_s14 = scalar_lea.vmem %s2925_s6, 128  ;;  %s2701_s16 = smov [#allocation3]  }
  0x6f   : > { %p2590_p5 = scmp.ne.s32.totalorder %s2925_s6, %s2589_s14  ;;  %s2594_s17 = sshll.u32 %s2701_s16, 4  ;;  %s2595_s17 = int_to_ptr.vmem [resolvable:$false] %s2594_s17 }
  0x70   : > { %s2596_s25 = scalar_lea.vmem %s2595_s17, 256  ;;  %p2597_p0 = scmp.lt.s32.totalorder %s2925_s6, %s2595_s17 }
  0x71   : > { %p2592_p7 = pnand %p2590_p5, %p2576_p12  ;;  %p2598_p4 = scmp.lt.s32.totalorder %s2596_s25, %s2589_s14 }
  0x73   : > { %p2593_p9 = pneg %p2592_p7  ;;  %p2599_p2 = por %p2598_p4, %p2597_p0 }
  0x75   : > { %p2600_p8 = pnand %p2599_p2, %p2593_p9 }
  0x77   : > { %2603 = shalt.err (!%p2600_p8)
}
  0x78   : > { %2387 = dma.hbm_to_vmem [thread:$0]  (!%p2929_p11), %s2923_s27, 128, %s2925_s6, %s236_s7  }
  0x79   : > { %p3146_p1 = scmp.ne.s32.totalorder %s3140_s30, 0 }
  0x7a   : > { %s2961_s10 = sand.u32 (!%p3146_p1), 1, %s2678_s19   ;;  %p3147_p12 = scmp.ne.s32.totalorder (!%p3146_p1), %s3137_s28, 0 }
  0x7b   : > { %256 = sbr.rel (%p3146_p1) target bundleno = 1426 (0x592), region = 40  ;;  %s2195_s18 = sshll.u32 (!%p3146_p1), %s2961_s10, 3 }
  0x7c   : > { %s259_s24 = scalar_lea.sflag (!%p3146_p1), [#allocation4], %s2961_s10  ;;  %s2967_s15 = scalar_lea.vmem (!%p3146_p1), [#allocation3], %s2195_s18 }
  0x82   : > { %2657 = dma.done.wait (%p3147_p12), %s259_s24, 128  }
  0x83   : > { %2659 = vsyncadd (%p3147_p12), %s259_s24, 4294967168  ;;  %p3148_p11 = scmp.ne.s32.totalorder %s3135_s26, 0 }
  0x85   : > { %2661 = dma.done.wait (%p3148_p11), [#allocation7], 1024  }
  0x86   : > { %2663 = vsyncadd (%p3148_p11), [#allocation7], 4294966272 }
  0x87   : > { %2665 = dma.done.wait (%p3148_p11), [#allocation10], 512  }
  0x88   : > { %2667 = vsyncadd (%p3148_p11), [#allocation10], 4294966784  ;;  %v2702_v0 = vmov 0.0|0.0   ;;  %vm2703_vm0 = vmmov 0   ;;  %v2704_v1 = vmov 0.0   ;;  %v302_v2 = vld [vmem:[#allocation8] sm:$0xff]  ;;  %v458_v27 = vlaneseq }
  0x89   : > { %2340 = vmatprep.subr.bf16.mxu0 %v2702_v0  ;;  %2275 = vmatprep.mubr.msk.f32.mxu0 %vm2703_vm0, %v2704_v1  ;;  %v303_v3 = vld [vmem:[#allocation8 + $0x8] sm:$0xff]  ;;  %v304_v4 = vld [vmem:[#allocation8 + $0x10] sm:$0xff]  ;;  %v305_v6 = vld [vmem:[#allocation8 + $0x18] sm:$0xff]  ;;  %vm306_vm1 = vcmask 261120   ;;  %vm382_vm2 = vcmask 523264   ;;  %vm646_vm3 = vcmask 64512  }
  0x8a   : > { %2346 = vmatprep.subr.bf16.mxu1 %v2702_v0  ;;  %2286 = vmatprep.mubr.msk.f32.mxu1 %vm2703_vm0, %v2704_v1  ;;  %v2341_v5 = vpack.c.bf16 %v303_v3, %v302_v2  ;;  %v384_v7 = vld [vmem:[#allocation6] sm:$0xff]  ;;  %v385_v8 = vld [vmem:[#allocation6 + $0x8] sm:$0xff]  ;;  %v386_v9 = vld [vmem:[#allocation6 + $0x10] sm:$0xff]  ;;  %v2344_v11 = vpack.c.bf16 %v305_v6, %v304_v4  ;;  %s2705_s26 = smov 112   ;;  %s2706_s28 = smov 120   ;;  %v459_v28 = vshrl.u32 %v458_v27, 7 }
  0x8b   : > { %v387_v10 = vld [vmem:[#allocation6 + $0x18] sm:$0xff]  ;;  %v2347_v12 = vpack.c.bf16 %v385_v8, %v384_v7  ;;  %s2707_s30 = smov 104   ;;  %s2708_s27 = smov 96   ;;  %v461_v29 = vand.u32 127, %v458_v27  ;;  %vm1906_vm5 = vcmask 130048   ;;  %vm1908_vm6 = vcmask 195584  }
  0x8c   : > { %2342 = vmatpush3.bf16.msra.mxu0 %v2341_v5  ;;  %v2350_v13 = vpack.c.bf16 %v387_v10, %v386_v9  ;;  %v301_v14 = vld [vmem:[%s2967_s15] sm:$0xff]  ;;  %s2709_s6 = smov 80   ;;  %s2710_s9 = smov 72  }
  0x8d   : > { %2343 = vmatprep.subr.bf16.mxu0 %v2702_v0  ;;  %2348 = vmatpush3.bf16.msra.mxu1 %v2347_v12  ;;  %vm462_vm4 = vcmp.le.s32.totalorder %v461_v29, %v459_v28  ;;  %s2711_s7 = smov 88   ;;  %v1912_v29 = vld [vmem:[#allocation9 + $0x10] sm:$0xff]  ;;  %s2712_s12 = smov 8  }
  0x8e   : > { %2349 = vmatprep.subr.bf16.mxu1 %v2702_v0  ;;  %s2713_s11 = smov 16   ;;  %s2714_s14 = smov 24  }
  0x8f   : > { %s2233_s25 = sshll.u32 %s2686_s21, 7  ;;  %s300_s24 = scalar_lea.vmem [#allocation11], %s2195_s18 }
  0x90   : > { %2345 = vmatpush3.bf16.msra.mxu0 %v2344_v11  ;;  %s2010_s15 = sshll.u32 %s300_s24, 4  ;;  %s2715_s18 = smov [#allocation11]   ;;  %s3074_s15 = int_to_ptr.vmem [resolvable:$true] %s2010_s15 }
  0x91   : > { %2299 = vmatprep.subr.mxu0 %v2704_v1  ;;  %2351 = vmatpush3.bf16.msra.mxu1 %v2350_v13  ;;  %s2604_s21 = scalar_lea.vmem %s3074_s15, 128 }
  0x92   : > { %2289 = vmatprep.subr.mxu1 %v2704_v1  ;;  %p2605_p13 = scmp.ne.s32.totalorder %s3074_s15, %s2604_s21 }
  0x93   : > { %2276 = vmatmul.mubr.msk.f32.vlgmr.msra.gmra.mrb[0].mxu0 %vm306_vm1, %v301_v14 }
  0x94   : > { %2301 = vmatprep.mubr.msk.f32.mxu0 %vm2703_vm0, %v2704_v1  ;;  %2287 = vmatmul.mubr.msk.f32.vlgmr.msra.gmra.mrb[0].mxu1 %vm306_vm1, %v301_v14  ;;  %p2606_p6 = pnand %p2605_p13, %p2906_p10 }
  0x95   : > { %2291 = vmatprep.mubr.msk.f32.mxu1 %vm2703_vm0, %v2704_v1 }
  0x96   : > { %p2607_p3 = pneg %p2606_p6 }
 0x166   : > { %v376_v15 = vpop.f32.mrb[0].mxu0 }
 0x167   : > { %383 = vst.msk [vmem:[#allocation2] sm:$0xff] %vm382_vm2, %v376_v15  ;;  %v2277_v16 = vpop.f32.mrb[1].mxu0  ;;  %v454_v17 = vpop.f32.mrb[0].mxu1 }
 0x168   : > { %v2288_v18 = vpop.f32.mrb[1].mxu1 }
 0x16e   : > { %v2998_v19 = vld [vmem:[#allocation2] sm:$0xff] }
 0x16f   : > { %1363 = vrot.lane.b32.xlu1 %v2998_v19, %s2705_s26  ;;  %1005 = vrot.lane.b32.xlu0 %v2998_v19, %s2706_s28 }
 0x170   : > { %2290 = vmatpush3.xpose.msk.msra.mxu1 %vm646_vm3, %v2998_v19 }
 0x171   : > { %2294 = vmatprep.subr.mxu1 %v2704_v1 }
 0x173   : > { %2292 = vmatmul.mubr.msk.f32.vlgmr.msra.gmra.mrb[2].mxu1 %vm646_vm3, %v454_v17  ;;  %1361 = vrot.lane.b32.xlu1 %v454_v17, %s2705_s26 }
 0x174   : > { %1003 = vrot.lane.b32.xlu0 %v454_v17, %s2706_s28  ;;  %2296 = vmatprep.mubr.msk.f32.mxu1 %vm2703_vm0, %v2704_v1 }
 0x177   : > { %1719 = vrot.lane.b32.xlu1 %v454_v17, %s2707_s30 }
 0x178   : > { %1721 = vrot.lane.b32.xlu0 %v2998_v19, %s2707_s30  ;;  %s3072_s30 = scalar_lea.hbm %s3127_s5, %s2233_s25 }
 0x17b   : > { %740 = vrot.lane.b32.xlu1 %v2998_v19, %s2708_s27  ;;  %s1996_s27 = scalar_lea.sflag [#allocation5], %s2961_s10 }
 0x1e1   : > { %v1364_v20 = vpop.permute.xlu1 %1363  ;;  %v1006_v21 = vpop.permute.xlu0 %1005 }
 0x1e2   : > { %2300 = vmatpush3.xpose.msk.msra.mxu0 %vm646_vm3, %v1006_v21 }
 0x1e3   : > { %2309 = vmatprep.subr.mxu0 %v2704_v1 }
 0x1e5   : > { %v1362_v22 = vpop.permute.xlu1 %1361 }
 0x1e6   : > { %v1004_v23 = vpop.permute.xlu0 %1003 }
 0x1e7   : > { %2302 = vmatmul.mubr.msk.f32.vlgmr.msra.gmra.mrb[2].mxu0 %vm646_vm3, %v1004_v23  ;;  %v1910_v23 = vld [vmem:[#allocation9] sm:$0xff] }
 0x1e8   : > { %2310 = vmatpush3.xpose.msk.msra.mxu0 %vm646_vm3, %v1364_v20  ;;  %2311 = vmatprep.mubr.msk.f32.mxu0 %vm2703_vm0, %v2704_v1 }
 0x1e9   : > { %v1720_v24 = vpop.permute.xlu1 %1719  ;;  %2319 = vmatprep.subr.mxu0 %v2704_v1 }
 0x1ea   : > { %v1722_v25 = vpop.permute.xlu0 %1721 }
 0x1eb   : > { %2312 = vmatmul.mubr.msk.f32.vlgmr.msra.gmra.mrb[4].mxu0 %vm646_vm3, %v1362_v22 }
 0x1ec   : > { %2320 = vmatpush3.xpose.msk.msra.mxu0 %vm646_vm3, %v1722_v25  ;;  %2321 = vmatprep.mubr.msk.f32.mxu0 %vm2703_vm0, %v2704_v1 }
 0x1ed   : > { %v741_v26 = vpop.permute.xlu1 %740  ;;  %2352 = vmatprep.subr.bf16.mxu0 %v2702_v0 }
 0x1ee   : > { %2295 = vmatpush3.msra.mxu1 %v741_v26 }
 0x1ef   : > { %2322 = vmatmul.mubr.msk.f32.vlgmr.msra.gmra.mrb[6].mxu0 %vm646_vm3, %v1720_v24  ;;  %2304 = vmatprep.subr.mxu1 %v2704_v1  ;;  %v1911_v24 = vld [vmem:[#allocation9 + $0x8] sm:$0xff] }
 0x1f0   : > { %2337 = vmatprep.mubr.msk.f32.mxu0 %vm2703_vm0, %v2704_v1  ;;  %v2353_v26 = vpack.c.bf16 %v1911_v24, %v1910_v23 }
 0x1f2   : > { %2354 = vmatpush3.bf16.msra.mxu0 %v2353_v26 }
 0x1f3   : > { %2355 = vmatprep.subr.bf16.mxu0 %v2702_v0 }
 0x246   : > { %v719_v30 = vpop.f32.mrb[2].mxu1 }
 0x247   : > { %v723_v31 = vsel %vm462_vm4, %v719_v30, -inf  ;;  %v2293_v32 = vpop.f32.mrb[3].mxu1  ;;  %v1913_v30 = vld [vmem:[#allocation9 + $0x18] sm:$0xff] }
 0x248   : > { %v724_v33 = vsel %vm646_vm3, %v723_v31, -inf }
 0x249   : > { %725 = vmax.xlane.f32.xlu0 %v724_v33 }
 0x2ba   : > { %v1077_v34 = vpop.f32.mrb[2].mxu0 }
 0x2bb   : > { %v1081_v35 = vsel %vm462_vm4, %v1077_v34, -inf  ;;  %v2303_v36 = vpop.f32.mrb[3].mxu0 }
 0x2bc   : > { %v1082_v37 = vsel %vm646_vm3, %v1081_v35, -inf }
 0x2bd   : > { %1083 = vmax.xlane.f32.xlu1 %v1082_v37 }
 0x2be   : > { %v1435_v38 = vpop.f32.mrb[4].mxu0 }
 0x2bf   : > { %v1439_v39 = vsel %vm462_vm4, %v1435_v38, -inf  ;;  %v2313_v40 = vpop.f32.mrb[5].mxu0 }
 0x2c0   : > { %v1440_v41 = vsel %vm646_vm3, %v1439_v39, -inf }
 0x2c1   : > { %1441 = vmax.xlane.f32.xlu0 %v1440_v41 }
 0x2c2   : > { %v1793_v42 = vpop.f32.mrb[6].mxu0 }
 0x2c3   : > { %v1797_v43 = vsel %vm462_vm4, %v1793_v42, -inf  ;;  %v2323_v44 = vpop.f32.mrb[7].mxu0 }
 0x2c4   : > { %v1798_v45 = vsel %vm646_vm3, %v1797_v43, -inf }
 0x2c5   : > { %1799 = vmax.xlane.f32.xlu0 %v1798_v45 }
 0x2ce   : > { %1456 = vrot.lane.b32.xlu1 %v2998_v19, %s2709_s6  ;;  %s2608_s6 = sshll.u32 %s2715_s18, 4  ;;  %s2609_s6 = int_to_ptr.vmem [resolvable:$false] %s2608_s6 }
 0x2cf   : > { %p2611_p5 = scmp.lt.s32.totalorder %s3074_s15, %s2609_s6 }
 0x2d2   : > { %1814 = vrot.lane.b32.xlu1 %v2998_v19, %s2710_s9  ;;  %s2610_s9 = scalar_lea.vmem %s2609_s6, 256 }
 0x2d3   : > { %p2612_p7 = scmp.lt.s32.totalorder %s2610_s9, %s2604_s21 }
 0x2d5   : > { %p2613_p9 = por %p2612_p7, %p2611_p5 }
 0x2d6   : > { %v3036_v46 = vpop.xlane.xlu0 %725 }
 0x2d7   : > { %v731_v47 = vsub.f32 %v723_v31, %v3036_v46  ;;  %v2356_v31 = vpack.c.bf16 %v1913_v30, %v1912_v29  ;;  %p2614_p0 = pnand %p2613_p9, %p2607_p3 }
 0x2d9   : > { %v732_v48 = vmul.f32 1.442695, %v731_v47  ;;  %2357 = vmatpush3.bf16.msra.mxu0 %v2356_v31  ;;  %v728_v47 = vsub.f32 -inf, %v3036_v46 }
 0x2db   : > { %1098 = vrot.lane.b32.xlu0 %v2998_v19, %s2711_s7  ;;  %2466 = vpow2.f32 %v732_v48  ;;  %v729_v48 = vmul.f32 1.442695, %v728_v47 }
 0x2e5   : > { %v2467_v49 = vpop.eup %2466 }
 0x2e6   : > { %2297 = vmatmul.mubr.msk.f32.vlgmr.msra.gmra.mrb[4].mxu1 %vm646_vm3, %v2467_v49  ;;  %v735_v6 = vsel %vm646_vm3, %v2467_v49, 0.0 }
 0x2e7   : > { %2306 = vmatprep.mubr.msk.f32.mxu1 %vm2703_vm0, %v2704_v1 }
 0x34a   : > { %v1084_v50 = vpop.xlane.xlu1 %1083 }
 0x34b   : > { %v1089_v51 = vsub.f32 %v1081_v35, %v1084_v50  ;;  %v1086_v9 = vsub.f32 -inf, %v1084_v50 }
 0x34d   : > { %v1090_v52 = vmul.f32 1.442695, %v1089_v51  ;;  %v1087_v10 = vmul.f32 1.442695, %v1086_v9 }
 0x34e   : > { %v1442_v53 = vpop.xlane.xlu0 %1441  ;;  %v1457_v60 = vpop.permute.xlu1 %1456 }
 0x34f   : > { %v1447_v54 = vsub.f32 %v1439_v39, %v1442_v53  ;;  %2468 = vpow2.f32 %v1090_v52  ;;  %v1444_v11 = vsub.f32 -inf, %v1442_v53 }
 0x351   : > { %v1448_v55 = vmul.f32 1.442695, %v1447_v54  ;;  %v1445_v12 = vmul.f32 1.442695, %v1444_v11 }
 0x352   : > { %v1800_v56 = vpop.xlane.xlu0 %1799  ;;  %v1815_v2 = vpop.permute.xlu1 %1814 }
 0x353   : > { %v1805_v57 = vsub.f32 %v1797_v43, %v1800_v56  ;;  %2470 = vpow2.f32 %v1448_v55  ;;  %v1802_v13 = vsub.f32 -inf, %v1800_v56 }
 0x355   : > { %v1806_v58 = vmul.f32 1.442695, %v1805_v57 }
 0x356   : > { %v1099_v59 = vpop.permute.xlu0 %1098 }
 0x357   : > { %2305 = vmatpush3.msra.mxu1 %v1099_v59  ;;  %2472 = vpow2.f32 %v1806_v58 }
 0x358   : > { %2314 = vmatprep.subr.mxu1 %v2704_v1  ;;  %2474 = vpow2.f32 %v1087_v10 }
 0x359   : > { %v2469_v61 = vpop.eup %2468  ;;  %2476 = vpow2.f32 %v1445_v12 }
 0x35a   : > { %2307 = vmatmul.mubr.msk.f32.vlgmr.msra.gmra.mrb[6].mxu1 %vm646_vm3, %v2469_v61  ;;  %v1093_v62 = vsel %vm646_vm3, %v2469_v61, 0.0  ;;  %v2230_v61 = vld [vmem:[%s3126_s4] ss:$0 sm:$0xff] }
 0x35b   : > { %2315 = vmatpush3.msra.mxu1 %v1457_v60  ;;  %1094 = vadd.xlane.f32.xlu0 %v1093_v62 }
 0x35c   : > { %2316 = vmatprep.mubr.msk.f32.mxu1 %vm2703_vm0, %v2704_v1  ;;  %2324 = vmatprep.subr.mxu1 %v2704_v1 }
 0x35d   : > { %v2471_v63 = vpop.eup %2470 }
 0x35e   : > { %2317 = vmatmul.mubr.msk.f32.vlgmr.msra.gmra.mrb[8].mxu1 %vm646_vm3, %v2471_v63  ;;  %v1451_v3 = vsel %vm646_vm3, %v2471_v63, 0.0 }
 0x35f   : > { %2325 = vmatpush3.msra.mxu1 %v1815_v2  ;;  %1452 = vadd.xlane.f32.xlu1 %v1451_v3 }
 0x360   : > { %2326 = vmatprep.mubr.msk.f32.mxu1 %vm2703_vm0, %v2704_v1  ;;  %v1803_v1 = vmul.f32 1.442695, %v1802_v13 }
 0x361   : > { %v2473_v4 = vpop.eup %2472 }
 0x362   : > { %2327 = vmatmul.mubr.msk.f32.vlgmr.msra.gmra.mrb[10].mxu1 %vm646_vm3, %v2473_v4  ;;  %v1809_v5 = vsel %vm646_vm3, %v2473_v4, 0.0  ;;  %2478 = vpow2.f32 %v1803_v1  ;;  %v2475_v14 = vpop.eup %2474 }
 0x363   : > { %1810 = vadd.xlane.f32.xlu0 %v1809_v5  ;;  %v1092_v16 = vmul.f32 0.0, %v2475_v14  ;;  %v2477_v17 = vpop.eup %2476 }
 0x364   : > { %v1450_v20 = vmul.f32 0.0, %v2477_v17 }
 0x367   : > { %736 = vadd.xlane.f32.xlu0 %v735_v6 }
 0x36c   : > { %v2479_v21 = vpop.eup %2478 }
 0x36d   : > { %v1808_v27 = vmul.f32 0.0, %v2479_v21 }
 0x3b9   : > { %v3056_v7 = vpop.f32.mrb[4].mxu1 }
 0x3ba   : > { %v2298_v8 = vpop.f32.mrb[5].mxu1 }
 0x3e8   : > { %v1095_v15 = vpop.xlane.xlu0 %1094 }
 0x3e9   : > { %v1096_v18 = vadd.f32 %v1095_v15, %v1092_v16 }
 0x3eb   : > { %2480 = vrcp.f32 %v1096_v18 }
 0x3ec   : > { %v1453_v19 = vpop.xlane.xlu1 %1452 }
 0x3ed   : > { %v1454_v22 = vadd.f32 %v1453_v19, %v1450_v20 }
 0x3ef   : > { %2482 = vrcp.f32 %v1454_v22 }
 0x3f0   : > { %v1811_v25 = vpop.xlane.xlu0 %1810 }
 0x3f1   : > { %v1812_v28 = vadd.f32 %v1811_v25, %v1808_v27 }
 0x3f3   : > { %2484 = vrcp.f32 %v1812_v28 }
 0x3f4   : > { %2486 = vpow2.f32 %v729_v48  ;;  %v737_v50 = vpop.xlane.xlu0 %736 }
 0x3f5   : > { %v2481_v35 = vpop.eup %2480 }
 0x3f9   : > { %v2483_v40 = vpop.eup %2482 }
 0x3fd   : > { %v2485_v44 = vpop.eup %2484 }
 0x3fe   : > { %v2487_v49 = vpop.eup %2486 }
 0x3ff   : > { %v734_v51 = vmul.f32 0.0, %v2487_v49 }
 0x401   : > { %v738_v52 = vadd.f32 %v737_v50, %v734_v51  ;;  %v816_v54 = vadd.f32 %v3056_v7, %v734_v51 }
 0x403   : > { %2488 = vrcp.f32 %v738_v52 }
 0x40d   : > { %v2489_v53 = vpop.eup %2488 }
 0x40e   : > { %v818_v56 = vmul.f32 %v2489_v53, %v816_v54 }
 0x42d   : > { %v1170_v32 = vpop.f32.mrb[6].mxu1 }
 0x42e   : > { %v1174_v33 = vadd.f32 %v1170_v32, %v1092_v16  ;;  %v2308_v34 = vpop.f32.mrb[7].mxu1 }
 0x430   : > { %v1176_v36 = vmul.f32 %v2481_v35, %v1174_v33 }
 0x431   : > { %v1528_v37 = vpop.f32.mrb[8].mxu1 }
 0x432   : > { %v1532_v38 = vadd.f32 %v1528_v37, %v1450_v20  ;;  %v2318_v39 = vpop.f32.mrb[9].mxu1  ;;  %1894 = vrot.lane.b32.xlu1 %v1176_v36, %s2712_s12 }
 0x434   : > { %v1534_v41 = vmul.f32 %v2483_v40, %v1532_v38 }
 0x435   : > { %v1886_v42 = vpop.f32.mrb[10].mxu1 }
 0x436   : > { %v1890_v43 = vadd.f32 %v1886_v42, %v1808_v27  ;;  %1898 = vrot.lane.b32.xlu0 %v1534_v41, %s2713_s11  ;;  %v2328_v0 = vpop.f32.mrb[11].mxu1 }
 0x438   : > { %v1892_v45 = vmul.f32 %v2485_v44, %v1890_v43 }
 0x43a   : > { %1902 = vrot.lane.b32.xlu1 %v1892_v45, %s2714_s14 }
 0x4a4   : > { %v1895_v55 = vpop.permute.xlu1 %1894 }
 0x4a5   : > { %v1905_v46 = vsel %vm646_vm3, %v818_v56, %v1895_v55 }
 0x4a8   : > { %v1899_v57 = vpop.permute.xlu0 %1898 }
 0x4a9   : > { %v1907_v58 = vsel %vm1906_vm5, %v1905_v46, %v1899_v57 }
 0x4ac   : > { %v1903_v59 = vpop.permute.xlu1 %1902 }
 0x4ad   : > { %v1909_v60 = vsel %vm1908_vm6, %v1907_v58, %v1903_v59 }
 0x4ae   : > { %2338 = vmatmul.mubr.msk.f32.vlgmr.msra.gmra.mrb[8].mxu0 %vm306_vm1, %v1909_v60 }
 0x581   : > { %v1990_v62 = vpop.f32.mrb[8].mxu0 }
 0x582   : > { %v1991_v63 = vadd.f32 %v2230_v61, %v1990_v62  ;;  %v2339_v2 = vpop.f32.mrb[9].mxu0 }
 0x584   : > { %1994 = vst.msk [vmem:[%s300_s24] sm:$0xff] %vm306_vm1, %v1991_v63 }
 0x585   : > { %2617 = shalt.err (!%p2614_p0)
}
 0x586   : > { %s2618_s10 = scalar_lea.hbm %s3072_s30, 128  ;;  %s2622_s11 = scalar_lea.hbm %s3127_s5, 256 }
 0x587   : > { %p2619_p4 = scmp.ne.s32.totalorder %s3072_s30, %s2618_s10  ;;  %p2623_p1 = scmp.lt.u32.totalorder %s3072_s30, %s3127_s5 }
 0x588   : > { %p2624_p12 = scmp.lt.u32.totalorder %s2622_s11, %s2618_s10  ;;  %p2626_p13 = scmp.lt.u32.totalorder %s2618_s10, %s3072_s30 }
 0x589   : > { %p2620_p2 = pnand %p2619_p4, %p2906_p10 }
 0x58a   : > { %p2625_p11 = por %p2624_p12, %p2623_p1 }
 0x58b   : > { %p2621_p8 = pneg %p2620_p2 }
 0x58c   : > { %p2627_p6 = por %p2626_p13, %p2625_p11 }
 0x58e   : > { %p2628_p3 = pnand %p2627_p6, %p2621_p8 }
 0x590   : > { %2631 = shalt.err (!%p2628_p3)
}
 0x591   : > { %2372 = dma.vmem_to_hbm [thread:$0]  (%p2906_p10), %s3074_s15, 128, %s3072_s30, %s1996_s27  }
 0x592 PF: > { %s3149_s17 = sld [smem:[#allocation16_spill]]  ;;  %s3150_s25 = sld [smem:[#allocation17_spill]] }
 0x593   : > { %p3152_p7 = scmp.ge.s32.totalorder %s2694_s23, 2 }
 0x598   : > { %s2022_s24 = sand.u32 1, %s3149_s17   ;;  %p3151_p5 = scmp.ne.s32.totalorder %s3150_s25, 0 }
 0x599   : > { %s2023_s26 = scalar_lea.sflag [#allocation5], %s2022_s24 }
 0x59a   : > { %p2389_p9 = pnand %p3152_p7, %p3151_p5 }
 0x59c   : > { %2669 = dma.done.wait (!%p2389_p9), %s2023_s26, 128  }
 0x59d   : > { %2671 = vsyncadd (!%p2389_p9), %s2023_s26, 4294967168  ;;  %s23_s23 = sadd.s32 1, %s2694_s23   ;;  %s3153_s18 = smov %s2678_s19 }
 0x59e   : > { %p20_p0 = scmp.ge.s32.totalorder %s23_s23, 4   ;;  %s3154_s19 = smov %s2682_s20 }
 0x59f   : > { %s3155_s20 = smov %s2918_s13  ;;  %s3156_s21 = smov %s2690_s22 }
 0x5a0   : > { %s3157_s22 = smov %s3159_s8  ;;  %22 = sbr.rel (!%p20_p0) target bundleno = 8 (0x8), region = 174 }
 0x5a7   :  { %2028 = vsyncpa [#allocation4], 1 }
 0x5a8   :  { %2030 = vsyncpa [#allocation4 + $0x1], 1 }
 0x5a9   :  { %2031 = vsyncpa [#allocation7], 1 }
 0x5aa   :  { %2032 = vsyncpa [#allocation10], 1 }
 0x5ab   :  { %2033 = vsyncpa [#allocation5], 1 }
 0x5ac   :  { %2035 = vsyncpa [#allocation5 + $0x1], 1 }

</bundles_post_ra>
